<compile_context>
chip_gen: v7x
topology: tpu7x:2x2x1
jax: 0.10.0
libtpu: 0.0.40
codegen_flags: <defaults>
</compile_context>

<pallas_src>
import functools

import jax
import jax.numpy as jnp
from jax.experimental import pallas as pl
from jax.experimental.pallas import tpu as pltpu


def _forward_tile(x, w_e01, b_e01, w_e2, b_e2, w_d01, b_d01, w_d2, b_d2, out_ref):
    """x: (block_b, F) fp32 (noise already applied). Writes (block_b, F) to out_ref."""
    # Put batch on the 128-lane axis for lane-dense compute (in-kernel transpose,
    # XLU slot is idle in this kernel).
    xT = x.T.astype(jnp.bfloat16)                                     # (F, block_b)

    # encoder: folded Linear(F->H0)+Linear(H0->H1), ReLU, Linear(H1->latent)
    h = jnp.dot(w_e01[...], xT, preferred_element_type=jnp.float32) + b_e01[...]
    h = jnp.maximum(h, 0.0).astype(jnp.bfloat16)
    z = jnp.dot(w_e2[...], h, preferred_element_type=jnp.float32) + b_e2[...]

    # decoder: folded Linear(latent->H1)+Linear(H1->H0), ReLU, Linear(H0->F), Sigmoid
    g = jnp.dot(w_d01[...], z.astype(jnp.bfloat16),
                preferred_element_type=jnp.float32) + b_d01[...]
    g = jnp.maximum(g, 0.0).astype(jnp.bfloat16)
    y = jnp.dot(w_d2[...], g, preferred_element_type=jnp.float32) + b_d2[...]

    out_ref[...] = jax.nn.sigmoid(y).T.astype(out_ref.dtype)          # back to (block_b, F)


def _dae_kernel_noisy(x_ref, noise_ref, w_e01, b_e01, w_e2, b_e2,
                      w_d01, b_d01, w_d2, b_d2, out_ref, *, noise_intensity):
    x = x_ref[...] + noise_intensity * noise_ref[...]
    _forward_tile(x, w_e01, b_e01, w_e2, b_e2, w_d01, b_d01, w_d2, b_d2, out_ref)


def _dae_kernel_clean(x_ref, w_e01, b_e01, w_e2, b_e2,
                      w_d01, b_d01, w_d2, b_d2, out_ref):
    _forward_tile(x_ref[...], w_e01, b_e01, w_e2, b_e2, w_d01, b_d01, w_d2, b_d2, out_ref)


def prepare_params(raw_params):
    """Fold the activation-free Linear pairs and pack params for the kernel.

    raw_params: 6 (W, b) pairs in execution order, PyTorch layout W:(out,in), b:(out,).
    Returns [W_e01, b_e01, W_e2, b_e2, W_d01, b_d01, W_d2, b_d2] with weights cast
    to bf16 (MXU inputs) and biases as fp32 columns (out, 1).
    NOTE: folding in fp32 then casting the product weight to bf16 is not
    bit-equivalent to running both layers separately (error covered by the 2e-2
    tolerance check below).
    """
    (we0, be0), (we1, be1), (we2, be2), (wd0, bd0), (wd1, bd1), (wd2, bd2) = raw_params
    w_e01 = we1 @ we0                      # (H1, F)
    b_e01 = we1 @ be0 + be1                # (H1,)
    w_d01 = wd1 @ wd0                      # (H0, latent)
    b_d01 = wd1 @ bd0 + bd1                # (H0,)
    bf = lambda w: w.astype(jnp.bfloat16)
    col = lambda b: b.reshape(-1, 1).astype(jnp.float32)
    return [bf(w_e01), col(b_e01), bf(we2), col(be2),
            bf(w_d01), col(b_d01), bf(wd2), col(bd2)]


def denoising_autoencoder(x, fused_params, *, noise_intensity=0.001, noise=None,
                          key=None, block_b=512):
    """x: (B, F) float32 -> (B, F) float32 reconstruction.

    noise: optional (B, F) standard-normal array (for reproducible comparisons);
           generated with jax.random.normal(key) if omitted and noise_intensity != 0.
    block_b: batch tile (sweep 256/512/1024; bounded by vreg pressure, not VMEM).
    """
    B, F = x.shape
    add_noise = float(noise_intensity) != 0.0
    if add_noise and noise is None:
        if key is None:
            key = jax.random.PRNGKey(0)
        noise = jax.random.normal(key, x.shape, x.dtype)

    block_b = min(block_b, B)
    pad = (-B) % block_b
    if pad:
        x = jnp.pad(x, ((0, pad), (0, 0)))
        if add_noise:
            noise = jnp.pad(noise, ((0, pad), (0, 0)))
    Bp = B + pad
    grid = (Bp // block_b,)

    act_spec = pl.BlockSpec((block_b, F), lambda i: (i, 0))
    # Grid-invariant, full-array (resident) blocks for the 8 fused weights/biases.
    param_specs = [pl.BlockSpec(p.shape, lambda i: (0, 0)) for p in fused_params]

    if add_noise:
        kernel = functools.partial(_dae_kernel_noisy,
                                   noise_intensity=float(noise_intensity))
        in_specs = [act_spec, act_spec] + param_specs
        args = (x, noise, *fused_params)
    else:
        # Noise/PRNG path skipped entirely at trace time when noise_intensity == 0.
        kernel = _dae_kernel_clean
        in_specs = [act_spec] + param_specs
        args = (x, *fused_params)

    out = pl.pallas_call(
        kernel,
        out_shape=jax.ShapeDtypeStruct((Bp, F), jnp.float32),
        grid_spec=pltpu.PrefetchScalarGridSpec(
            num_scalar_prefetch=0,
            grid=grid,
            in_specs=in_specs,
            out_specs=act_spec,
        ),
        compiler_params=pltpu.CompilerParams(
            dimension_semantics=("parallel",),   # batch tiles shard across TCs (v7x)
            vmem_limit_bytes=32 * 1024 * 1024,   # plenty of headroom on every generation
        ),
    )(*args)
    return out[:B]


def _init_linear(key, fan_in, fan_out):
    """PyTorch nn.Linear default init, kept in PyTorch layout W:(out,in), b:(out,)."""
    kw, kb = jax.random.split(key)
    bound = 1.0 / (float(fan_in) ** 0.5)
    w = jax.random.uniform(kw, (fan_out, fan_in), jnp.float32, -bound, bound)
    b = jax.random.uniform(kb, (fan_out,), jnp.float32, -bound, bound)
    return w, b


def _reference_fused(x, fused):
    """Same math / same bf16 casts as the kernel, in plain XLA."""
    w_e01, b_e01, w_e2, b_e2, w_d01, b_d01, w_d2, b_d2 = fused
    def lin(w, b, a):
        return jnp.dot(w, a.astype(jnp.bfloat16),
                       preferred_element_type=jnp.float32) + b
    a = x.T.astype(jnp.float32)
    h = jnp.maximum(lin(w_e01, b_e01, a), 0.0)
    z = lin(w_e2, b_e2, h)
    g = jnp.maximum(lin(w_d01, b_d01, z), 0.0)
    y = lin(w_d2, b_d2, g)
    return jax.nn.sigmoid(y).T


def _reference_fp32(x, raw_params):
    """Unfused fp32 math exactly as the PyTorch module (no noise)."""
    (we0, be0), (we1, be1), (we2, be2), (wd0, bd0), (wd1, bd1), (wd2, bd2) = raw_params
    lin = lambda a, w, b: a @ w.T + b
    h = lin(x, we0, be0)
    h = jnp.maximum(lin(h, we1, be1), 0.0)
    z = lin(h, we2, be2)
    g = lin(z, wd0, bd0)
    g = jnp.maximum(lin(g, wd1, bd1), 0.0)
    return jax.nn.sigmoid(lin(g, wd2, bd2))


if __name__ == "__main__":
    in_features = 16
    hidden_dimensions = [32, 32]
    latent_dim = 8
    batch = 1024                     # 2 grid steps of 512 -> both v7x TCs get work
    noise_intensity = 0.001

    key = jax.random.PRNGKey(0)
    keys = jax.random.split(key, 8)

    raw_params = [
        _init_linear(keys[0], in_features, hidden_dimensions[0]),
        _init_linear(keys[1], hidden_dimensions[0], hidden_dimensions[1]),
        _init_linear(keys[2], hidden_dimensions[1], latent_dim),
        _init_linear(keys[3], latent_dim, hidden_dimensions[1]),
        _init_linear(keys[4], hidden_dimensions[1], hidden_dimensions[0]),
        _init_linear(keys[5], hidden_dimensions[0], in_features),
    ]
    fused = prepare_params(raw_params)
    x = jax.random.uniform(keys[6], (batch, in_features), jnp.float32)
    noise = jax.random.normal(keys[7], x.shape, jnp.float32)

    # (1) Main run: denoising forward (noise passed explicitly so the reference
    #     reproduces it exactly).
    out = denoising_autoencoder(x, fused, noise_intensity=noise_intensity, noise=noise)
    out = jax.block_until_ready(out)
    assert out.shape == (batch, in_features)
    assert bool(jnp.all(jnp.isfinite(out)))
    ref_noisy = _reference_fused(x + noise_intensity * noise, fused)
    assert jnp.allclose(out, ref_noisy, atol=2e-3, rtol=2e-3)

    # (2) Clean path (noise_intensity = 0 -> noise branch dropped at trace time).
    out0 = jax.block_until_ready(
        denoising_autoencoder(x, fused, noise_intensity=0.0))
    assert jnp.allclose(out0, _reference_fused(x, fused), atol=2e-3, rtol=2e-3)

    # (3) Semantic check vs the unfused fp32 PyTorch math (fold + bf16 tolerance).
    assert jnp.allclose(out0, _reference_fp32(x, raw_params), atol=2e-2, rtol=2e-2)

    print("KERNEL_OK")
</pallas_src>

<mosaic_0001>
module attributes {stable_mosaic.version = 11 : i64} {
  func.func @_dae_kernel_noisy(%arg0: i32, %arg1: memref<512x16xf32, #tpu.memory_space<vmem>>, %arg2: memref<512x16xf32, #tpu.memory_space<vmem>>, %arg3: memref<32x16xbf16, #tpu.memory_space<vmem>>, %arg4: memref<32x1xf32, #tpu.memory_space<vmem>>, %arg5: memref<8x32xbf16, #tpu.memory_space<vmem>>, %arg6: memref<8x1xf32, #tpu.memory_space<vmem>>, %arg7: memref<32x8xbf16, #tpu.memory_space<vmem>>, %arg8: memref<32x1xf32, #tpu.memory_space<vmem>>, %arg9: memref<16x32xbf16, #tpu.memory_space<vmem>>, %arg10: memref<16x1xf32, #tpu.memory_space<vmem>>, %arg11: memref<512x16xf32, #tpu.memory_space<vmem>>) attributes {dimension_semantics = [#tpu.dimension_semantics<parallel>], iteration_bounds = array<i64: 2>, scalar_prefetch = 0 : i64, scratch_operands = 0 : i64, tpu.core_type = #tpu.core_type<tc>, window_params = [{transform_indices = @transform_0, window_bounds = array<i64: 512, 16>}, {transform_indices = @transform_1, window_bounds = array<i64: 512, 16>}, {pipeline_mode = #tpu.pipeline_mode<synchronous>, transform_indices = @transform_2, window_bounds = array<i64: 32, 16>}, {pipeline_mode = #tpu.pipeline_mode<synchronous>, transform_indices = @transform_3, window_bounds = array<i64: 32, 1>}, {pipeline_mode = #tpu.pipeline_mode<synchronous>, transform_indices = @transform_4, window_bounds = array<i64: 8, 32>}, {pipeline_mode = #tpu.pipeline_mode<synchronous>, transform_indices = @transform_5, window_bounds = array<i64: 8, 1>}, {pipeline_mode = #tpu.pipeline_mode<synchronous>, transform_indices = @transform_6, window_bounds = array<i64: 32, 8>}, {pipeline_mode = #tpu.pipeline_mode<synchronous>, transform_indices = @transform_7, window_bounds = array<i64: 32, 1>}, {pipeline_mode = #tpu.pipeline_mode<synchronous>, transform_indices = @transform_8, window_bounds = array<i64: 16, 32>}, {pipeline_mode = #tpu.pipeline_mode<synchronous>, transform_indices = @transform_9, window_bounds = array<i64: 16, 1>}, {transform_indices = @transform_10, window_bounds = array<i64: 512, 16>}]} {
    %c0 = arith.constant 0 : index
    %c0_0 = arith.constant 0 : index
    %0 = vector.load %arg1[%c0, %c0_0] : memref<512x16xf32, #tpu.memory_space<vmem>>, vector<512x16xf32>
    %c0_1 = arith.constant 0 : index
    %c0_2 = arith.constant 0 : index
    %1 = vector.load %arg2[%c0_1, %c0_2] : memref<512x16xf32, #tpu.memory_space<vmem>>, vector<512x16xf32>
    %cst = arith.constant 1.000000e-03 : f32
    %2 = vector.broadcast %cst : f32 to vector<512x16xf32>
    %3 = arith.mulf %2, %1 : vector<512x16xf32>
    %4 = arith.addf %0, %3 : vector<512x16xf32>
    %5 = tpu.transpose %4, [1, 0] : vector<512x16xf32> -> vector<16x512xf32>
    %6 = arith.truncf %5 : vector<16x512xf32> to vector<16x512xbf16>
    %c0_3 = arith.constant 0 : index
    %c0_4 = arith.constant 0 : index
    %7 = vector.load %arg3[%c0_3, %c0_4] : memref<32x16xbf16, #tpu.memory_space<vmem>>, vector<32x16xbf16>
    %cst_5 = arith.constant dense<0.000000e+00> : vector<32x512xf32>
    %8 = tpu.matmul %7, %6, %cst_5 {dimension_numbers = #tpu.dot_dimension_numbers<[1], [0], [0], [1], [0, 0, 1, 1], [], []>} : vector<32x16xbf16>, vector<16x512xbf16>, vector<32x512xf32> -> vector<32x512xf32>
    %c0_6 = arith.constant 0 : index
    %c0_7 = arith.constant 0 : index
    %9 = vector.load %arg4[%c0_6, %c0_7] : memref<32x1xf32, #tpu.memory_space<vmem>>, vector<32x1xf32>
    %10 = vector.broadcast %9 : vector<32x1xf32> to vector<32x512xf32>
    %11 = arith.addf %8, %10 : vector<32x512xf32>
    %cst_8 = arith.constant 0.000000e+00 : f32
    %12 = vector.broadcast %cst_8 : f32 to vector<32x512xf32>
    %13 = arith.maximumf %11, %12 : vector<32x512xf32>
    %14 = arith.truncf %13 : vector<32x512xf32> to vector<32x512xbf16>
    %c0_9 = arith.constant 0 : index
    %c0_10 = arith.constant 0 : index
    %15 = vector.load %arg5[%c0_9, %c0_10] : memref<8x32xbf16, #tpu.memory_space<vmem>>, vector<8x32xbf16>
    %cst_11 = arith.constant dense<0.000000e+00> : vector<8x512xf32>
    %16 = tpu.matmul %15, %14, %cst_11 {dimension_numbers = #tpu.dot_dimension_numbers<[1], [0], [0], [1], [0, 0, 1, 1], [], []>} : vector<8x32xbf16>, vector<32x512xbf16>, vector<8x512xf32> -> vector<8x512xf32>
    %c0_12 = arith.constant 0 : index
    %c0_13 = arith.constant 0 : index
    %17 = vector.load %arg6[%c0_12, %c0_13] : memref<8x1xf32, #tpu.memory_space<vmem>>, vector<8x1xf32>
    %18 = vector.broadcast %17 : vector<8x1xf32> to vector<8x512xf32>
    %19 = arith.addf %16, %18 : vector<8x512xf32>
    %c0_14 = arith.constant 0 : index
    %c0_15 = arith.constant 0 : index
    %20 = vector.load %arg7[%c0_14, %c0_15] : memref<32x8xbf16, #tpu.memory_space<vmem>>, vector<32x8xbf16>
    %21 = arith.truncf %19 : vector<8x512xf32> to vector<8x512xbf16>
    %cst_16 = arith.constant dense<0.000000e+00> : vector<32x512xf32>
    %22 = tpu.matmul %20, %21, %cst_16 {dimension_numbers = #tpu.dot_dimension_numbers<[1], [0], [0], [1], [0, 0, 1, 1], [], []>} : vector<32x8xbf16>, vector<8x512xbf16>, vector<32x512xf32> -> vector<32x512xf32>
    %c0_17 = arith.constant 0 : index
    %c0_18 = arith.constant 0 : index
    %23 = vector.load %arg8[%c0_17, %c0_18] : memref<32x1xf32, #tpu.memory_space<vmem>>, vector<32x1xf32>
    %24 = vector.broadcast %23 : vector<32x1xf32> to vector<32x512xf32>
    %25 = arith.addf %22, %24 : vector<32x512xf32>
    %cst_19 = arith.constant 0.000000e+00 : f32
    %26 = vector.broadcast %cst_19 : f32 to vector<32x512xf32>
    %27 = arith.maximumf %25, %26 : vector<32x512xf32>
    %28 = arith.truncf %27 : vector<32x512xf32> to vector<32x512xbf16>
    %c0_20 = arith.constant 0 : index
    %c0_21 = arith.constant 0 : index
    %29 = vector.load %arg9[%c0_20, %c0_21] : memref<16x32xbf16, #tpu.memory_space<vmem>>, vector<16x32xbf16>
    %cst_22 = arith.constant dense<0.000000e+00> : vector<16x512xf32>
    %30 = tpu.matmul %29, %28, %cst_22 {dimension_numbers = #tpu.dot_dimension_numbers<[1], [0], [0], [1], [0, 0, 1, 1], [], []>} : vector<16x32xbf16>, vector<32x512xbf16>, vector<16x512xf32> -> vector<16x512xf32>
    %c0_23 = arith.constant 0 : index
    %c0_24 = arith.constant 0 : index
    %31 = vector.load %arg10[%c0_23, %c0_24] : memref<16x1xf32, #tpu.memory_space<vmem>>, vector<16x1xf32>
    %32 = vector.broadcast %31 : vector<16x1xf32> to vector<16x512xf32>
    %33 = arith.addf %30, %32 : vector<16x512xf32>
    %34 = arith.negf %33 : vector<16x512xf32>
    %35 = math.exp %34 : vector<16x512xf32>
    %cst_25 = arith.constant 1.000000e+00 : f32
    %36 = vector.broadcast %cst_25 : f32 to vector<16x512xf32>
    %37 = arith.addf %36, %35 : vector<16x512xf32>
    %38 = arith.divf %36, %37 : vector<16x512xf32>
    %39 = tpu.transpose %38, [1, 0] : vector<16x512xf32> -> vector<512x16xf32>
    %c0_26 = arith.constant 0 : index
    %c0_27 = arith.constant 0 : index
    %40 = vector.load %arg11[%c0_26, %c0_27] : memref<512x16xf32, #tpu.memory_space<vmem>>, vector<512x16xf32>
    tpu.vector_store %arg11[%c0_26, %c0_27], %39 {strides = array<i32>} : memref<512x16xf32, #tpu.memory_space<vmem>>, vector<512x16xf32>,
    return
  }
  func.func @transform_0(%arg0: i32) -> (i32, i32) {
    %c0_i32 = arith.constant 0 : i32
    %c0_i32_0 = arith.constant 0 : i32
    return %arg0, %c0_i32 : i32, i32
  }
  func.func @transform_1(%arg0: i32) -> (i32, i32) {
    %c0_i32 = arith.constant 0 : i32
    %c0_i32_0 = arith.constant 0 : i32
    return %arg0, %c0_i32 : i32, i32
  }
  func.func @transform_2(%arg0: i32) -> (i32, i32) {
    %c0_i32 = arith.constant 0 : i32
    %c0_i32_0 = arith.constant 0 : i32
    %c0_i32_1 = arith.constant 0 : i32
    return %c0_i32, %c0_i32_0 : i32, i32
  }
  func.func @transform_3(%arg0: i32) -> (i32, i32) {
    %c0_i32 = arith.constant 0 : i32
    %c0_i32_0 = arith.constant 0 : i32
    %c0_i32_1 = arith.constant 0 : i32
    return %c0_i32, %c0_i32_0 : i32, i32
  }
  func.func @transform_4(%arg0: i32) -> (i32, i32) {
    %c0_i32 = arith.constant 0 : i32
    %c0_i32_0 = arith.constant 0 : i32
    %c0_i32_1 = arith.constant 0 : i32
    return %c0_i32, %c0_i32_0 : i32, i32
  }
  func.func @transform_5(%arg0: i32) -> (i32, i32) {
    %c0_i32 = arith.constant 0 : i32
    %c0_i32_0 = arith.constant 0 : i32
    %c0_i32_1 = arith.constant 0 : i32
    return %c0_i32, %c0_i32_0 : i32, i32
  }
  func.func @transform_6(%arg0: i32) -> (i32, i32) {
    %c0_i32 = arith.constant 0 : i32
    %c0_i32_0 = arith.constant 0 : i32
    %c0_i32_1 = arith.constant 0 : i32
    return %c0_i32, %c0_i32_0 : i32, i32
  }
  func.func @transform_7(%arg0: i32) -> (i32, i32) {
    %c0_i32 = arith.constant 0 : i32
    %c0_i32_0 = arith.constant 0 : i32
    %c0_i32_1 = arith.constant 0 : i32
    return %c0_i32, %c0_i32_0 : i32, i32
  }
  func.func @transform_8(%arg0: i32) -> (i32, i32) {
    %c0_i32 = arith.constant 0 : i32
    %c0_i32_0 = arith.constant 0 : i32
    %c0_i32_1 = arith.constant 0 : i32
    return %c0_i32, %c0_i32_0 : i32, i32
  }
  func.func @transform_9(%arg0: i32) -> (i32, i32) {
    %c0_i32 = arith.constant 0 : i32
    %c0_i32_0 = arith.constant 0 : i32
    %c0_i32_1 = arith.constant 0 : i32
    return %c0_i32, %c0_i32_0 : i32, i32
  }
  func.func @transform_10(%arg0: i32) -> (i32, i32) {
    %c0_i32 = arith.constant 0 : i32
    %c0_i32_0 = arith.constant 0 : i32
    return %arg0, %c0_i32 : i32, i32
  }
}

</mosaic_0001>

<bundles_post_ra>
// kernel: tpu_custom_call.1
= control target key start
LH: loop header
LB: loop body
LE: loop exit
PB: predicated region body
PF: predicated region fallthrough
CT: control target
= control target key end

     0   :  { %s1887_s13 = smov 0   ;;  %s2247_s0 = inlined_call_operand.vmem [shape: f32[1024,16], index: 0, kind: input, shape index: {}]   ;;  %s2248_s1 = inlined_call_operand.vmem [shape: f32[1024,16], index: 1, kind: input, shape index: {}]   ;;  %s2249_s2 = inlined_call_operand.vmem [shape: bf16[32,16], index: 2, kind: input, shape index: {}]   ;;  %s2250_s3 = inlined_call_operand.vmem [shape: f32[32,1], index: 3, kind: input, shape index: {}]   ;;  %s2251_s4 = inlined_call_operand.vmem [shape: bf16[8,32], index: 4, kind: input, shape index: {}]   ;;  %s2252_s5 = inlined_call_operand.vmem [shape: f32[8,1], index: 5, kind: input, shape index: {}]   ;;  %s2253_s6 = inlined_call_operand.vmem [shape: bf16[32,8], index: 6, kind: input, shape index: {}]   ;;  %s2254_s7 = inlined_call_operand.vmem [shape: f32[32,1], index: 7, kind: input, shape index: {}]   ;;  %s2255_s8 = inlined_call_operand.vmem [shape: bf16[16,32], index: 8, kind: input, shape index: {}]   ;;  %s2256_s9 = inlined_call_operand.vmem [shape: f32[16,1], index: 9, kind: input, shape index: {}]   ;;  %s2257_s10 = inlined_call_operand.vmem [shape: f32[1024,16], index: 10, kind: output, shape index: {}]  }
   0x1 LB: > { %s1650_s14 = sadd.s32 4294967295, %s1829_s13   ;;  %p1654_p0 = scmp.ge.s32.totalorder %s1829_s13, 1  ;;  %s1829_s13 = sphi %s1887_s13, %s20_s13  }
   0x2   : > { %p324_p1 = scmp.lt.s32.totalorder %s1829_s13, 3 }
   0x4   : > { %p325_p2 = pnand %p1654_p0, %p324_p1 }
   0x5   : > { %s1655_s15 = sshll.u32 (!%p325_p2), %s1650_s14, 6  ;;  %vm812_vm0 = vcmask (!%p325_p2), 130048   ;;  %vm956_vm1 = vcmask (!%p325_p2), 261120   ;;  %vm1091_vm2 = vcmask (!%p325_p2), 1043456   ;;  %vm1084_vm3 = vcmask (!%p325_p2), 64512  }
   0x6   : > { %328 = sbr.rel (%p325_p2) target bundleno = 1352 (0x548), region = 60  ;;  %p368_p3 = scmp.lt.s32.totalorder (!%p325_p2), %s1655_s15, 127 }
   0xd   : > { %s2259_s15 = smov (!%p368_p3, %s1655_s15), 127 }
   0xe   : > { %s1895_s16 = sshll.u32 %s2259_s15, 3 }
   0xf   : > { %s1901_s19 = scalar_lea.vmem %s2247_s0, %s1895_s16  ;;  %s1907_s22 = scalar_lea.vmem %s2248_s1, %s1895_s16 }
  0x10   : > { %v402_v0 = vld [vmem:[%s1901_s19 + $0x80] sm:$0xff]  ;;  %v403_v13 = vld [vmem:[%s1901_s19 + $0x88] sm:$0xff]  ;;  %v404_v30 = vld [vmem:[%s1901_s19 + $0x90] sm:$0xff]  ;;  %s2114_s23 = scalar_lea.vmem %s2257_s10, %s1895_s16 }
  0x11   : > { %v466_v1 = vld [vmem:[%s1907_s22 + $0x80] sm:$0xff]  ;;  %v467_v14 = vld [vmem:[%s1907_s22 + $0x88] sm:$0xff]  ;;  %v468_v31 = vld [vmem:[%s1907_s22 + $0x90] sm:$0xff] }
  0x12   : > { %v434_v2 = vld [vmem:[%s1901_s19 + $0x180] sm:$0xff]  ;;  %v530_v4 = vmul.f32 0.001, %v466_v1  ;;  %v435_v16 = vld [vmem:[%s1901_s19 + $0x188] sm:$0xff]  ;;  %v531_v18 = vmul.f32 0.001, %v467_v14 }
  0x13   : > { %v498_v3 = vld [vmem:[%s1907_s22 + $0x180] sm:$0xff]  ;;  %v499_v17 = vld [vmem:[%s1907_s22 + $0x188] sm:$0xff]  ;;  %v436_v34 = vld [vmem:[%s1901_s19 + $0x190] sm:$0xff]  ;;  %v532_v36 = vmul.f32 0.001, %v468_v31 }
  0x14   : > { %v386_v5 = vld [vmem:[%s1901_s19] sm:$0xff]  ;;  %v562_v6 = vmul.f32 0.001, %v498_v3  ;;  %v594_v10 = vadd.f32 %v530_v4, %v402_v0  ;;  %v387_v19 = vld [vmem:[%s1901_s19 + $0x8] sm:$0xff]  ;;  %v563_v22 = vmul.f32 0.001, %v499_v17  ;;  %v595_v27 = vadd.f32 %v531_v18, %v403_v13 }
  0x15   : > { %v418_v7 = vld [vmem:[%s1901_s19 + $0x100] sm:$0xff]  ;;  %v419_v23 = vld [vmem:[%s1901_s19 + $0x108] sm:$0xff]  ;;  %v500_v35 = vld [vmem:[%s1907_s22 + $0x190] sm:$0xff]  ;;  %v596_v45 = vadd.f32 %v532_v36, %v404_v30 }
  0x16   : > { %v450_v8 = vld [vmem:[%s1907_s22] sm:$0xff]  ;;  %v626_v15 = vadd.f32 %v562_v6, %v434_v2  ;;  %v451_v24 = vld [vmem:[%s1907_s22 + $0x8] sm:$0xff]  ;;  %v627_v33 = vadd.f32 %v563_v22, %v435_v16  ;;  %v388_v37 = vld [vmem:[%s1901_s19 + $0x10] sm:$0xff]  ;;  %v564_v40 = vmul.f32 0.001, %v500_v35 }
  0x17   : > { %v482_v9 = vld [vmem:[%s1907_s22 + $0x100] sm:$0xff]  ;;  %v514_v11 = vmul.f32 0.001, %v450_v8  ;;  %v483_v25 = vld [vmem:[%s1907_s22 + $0x108] sm:$0xff]  ;;  %v515_v28 = vmul.f32 0.001, %v451_v24 }
  0x18   : > { %v546_v12 = vmul.f32 0.001, %v482_v9  ;;  %v1700_v26 = vpack.i.bf16 %v626_v15, %v594_v10  ;;  %v547_v29 = vmul.f32 0.001, %v483_v25  ;;  %v420_v41 = vld [vmem:[%s1901_s19 + $0x110] sm:$0xff]  ;;  %v1702_v44 = vpack.i.bf16 %v627_v33, %v595_v27  ;;  %v405_v48 = vld [vmem:[%s1901_s19 + $0x98] sm:$0xff] }
  0x19   : > { %v578_v20 = vadd.f32 %v514_v11, %v386_v5  ;;  %v579_v38 = vadd.f32 %v515_v28, %v387_v19  ;;  %v452_v42 = vld [vmem:[%s1907_s22 + $0x10] sm:$0xff]  ;;  %v628_v50 = vadd.f32 %v564_v40, %v436_v34  ;;  %v437_v51 = vld [vmem:[%s1901_s19 + $0x198] sm:$0xff]  ;;  %v406_v0 = vld [vmem:[%s1901_s19 + $0xa0] sm:$0xff] }
  0x1a   : > { %v610_v21 = vadd.f32 %v546_v12, %v418_v7  ;;  %1701 = vxpose.xlu0.b32.start [1/16] (narrow) %v1700_v26, 16  ;;  %v611_v39 = vadd.f32 %v547_v29, %v419_v23  ;;  %v484_v43 = vld [vmem:[%s1907_s22 + $0x110] sm:$0xff]  ;;  %v516_v46 = vmul.f32 0.001, %v452_v42  ;;  %v469_v52 = vld [vmem:[%s1907_s22 + $0x98] sm:$0xff]  ;;  %v438_v5 = vld [vmem:[%s1901_s19 + $0x1a0] sm:$0xff] }
  0x1b   : > { %v548_v47 = vmul.f32 0.001, %v484_v43  ;;  %v501_v53 = vld [vmem:[%s1907_s22 + $0x198] sm:$0xff]  ;;  %v533_v56 = vmul.f32 0.001, %v469_v52  ;;  %v1704_v60 = vpack.i.bf16 %v628_v50, %v596_v45  ;;  %v470_v6 = vld [vmem:[%s1907_s22 + $0xa0] sm:$0xff] }
  0x1c   : > { %v1742_v32 = vpack.i.bf16 %v610_v21, %v578_v20  ;;  %v1744_v49 = vpack.i.bf16 %v611_v39, %v579_v38  ;;  %v580_v54 = vadd.f32 %v516_v46, %v388_v37  ;;  %v565_v57 = vmul.f32 0.001, %v501_v53  ;;  %v389_v58 = vld [vmem:[%s1901_s19 + $0x18] sm:$0xff]  ;;  %v502_v7 = vld [vmem:[%s1907_s22 + $0x1a0] sm:$0xff]  ;;  %v407_v17 = vld [vmem:[%s1901_s19 + $0xa8] sm:$0xff] }
  0x1d   : > { %v612_v55 = vadd.f32 %v548_v47, %v420_v41  ;;  %v453_v59 = vld [vmem:[%s1907_s22 + $0x18] sm:$0xff]  ;;  %v597_v2 = vadd.f32 %v533_v56, %v405_v48  ;;  %v534_v9 = vmul.f32 0.001, %v470_v6  ;;  %v566_v10 = vmul.f32 0.001, %v502_v7  ;;  %v390_v11 = vld [vmem:[%s1901_s19 + $0x20] sm:$0xff] }
  0x1e   : > { %1743 = vxpose.xlu1.b32.start [1/16] (narrow) %v1742_v32, 16  ;;  %1703 = vxpose.xlu0.b32.cont [2/16] (narrow) %v1702_v44, 16  ;;  %v421_v61 = vld [vmem:[%s1901_s19 + $0x118] sm:$0xff]  ;;  %v517_v63 = vmul.f32 0.001, %v453_v59  ;;  %v629_v3 = vadd.f32 %v565_v57, %v437_v51  ;;  %v454_v12 = vld [vmem:[%s1907_s22 + $0x20] sm:$0xff] }
  0x1f   : > { %v485_v62 = vld [vmem:[%s1907_s22 + $0x118] sm:$0xff]  ;;  %v1746_v1 = vpack.i.bf16 %v612_v55, %v580_v54  ;;  %v422_v14 = vld [vmem:[%s1901_s19 + $0x120] sm:$0xff]  ;;  %v518_v16 = vmul.f32 0.001, %v454_v12  ;;  %v598_v19 = vadd.f32 %v534_v9, %v406_v0  ;;  %v630_v20 = vadd.f32 %v566_v10, %v438_v5  ;;  %v439_v22 = vld [vmem:[%s1901_s19 + $0x1a8] sm:$0xff] }
  0x20   : > { %v549_v4 = vmul.f32 0.001, %v485_v62  ;;  %v581_v8 = vadd.f32 %v517_v63, %v389_v58  ;;  %v486_v15 = vld [vmem:[%s1907_s22 + $0x120] sm:$0xff]  ;;  %v1706_v18 = vpack.i.bf16 %v629_v3, %v597_v2  ;;  %v471_v23 = vld [vmem:[%s1907_s22 + $0xa8] sm:$0xff]  ;;  %v472_v38 = vld [vmem:[%s1907_s22 + $0xb0] sm:$0xff]  ;;  %v1831_v39 = vmov 0  }
  0x21   : > { %v550_v21 = vmul.f32 0.001, %v486_v15  ;;  %v503_v24 = vld [vmem:[%s1907_s22 + $0x1a8] sm:$0xff]  ;;  %v582_v26 = vadd.f32 %v518_v16, %v390_v11  ;;  %v535_v27 = vmul.f32 0.001, %v471_v23  ;;  %851 = vmatprep.mubr.bf16.mxu0 %v1831_v39  ;;  %904 = vmatprep.mubr.bf16.mxu1 %v1831_v39  ;;  %v1708_v40 = vpack.i.bf16 %v630_v20, %v598_v19  ;;  %v408_v41 = vld [vmem:[%s1901_s19 + $0xb0] sm:$0xff] }
  0x22   : > { %1745 = vxpose.xlu1.b32.cont [2/16] (narrow) %v1744_v49, 16  ;;  %v613_v13 = vadd.f32 %v549_v4, %v421_v61  ;;  %1705 = vxpose.xlu0.b32.cont [3/16] (narrow) %v1704_v60, 16  ;;  %v567_v28 = vmul.f32 0.001, %v503_v24  ;;  %v391_v29 = vld [vmem:[%s1901_s19 + $0x28] sm:$0xff]  ;;  %v440_v42 = vld [vmem:[%s1901_s19 + $0x1b0] sm:$0xff] }
  0x23   : > { %v614_v30 = vadd.f32 %v550_v21, %v422_v14  ;;  %v423_v31 = vld [vmem:[%s1901_s19 + $0x128] sm:$0xff]  ;;  %v599_v34 = vadd.f32 %v535_v27, %v407_v17  ;;  %v504_v43 = vld [vmem:[%s1907_s22 + $0x1b0] sm:$0xff]  ;;  %v536_v44 = vmul.f32 0.001, %v472_v38  ;;  %v473_v55 = vld [vmem:[%s1907_s22 + $0xb8] sm:$0xff] }
  0x24   : > { %v1748_v25 = vpack.i.bf16 %v613_v13, %v581_v8  ;;  %v455_v32 = vld [vmem:[%s1907_s22 + $0x28] sm:$0xff]  ;;  %v631_v35 = vadd.f32 %v567_v28, %v439_v22  ;;  %v568_v48 = vmul.f32 0.001, %v504_v43  ;;  %v392_v49 = vld [vmem:[%s1901_s19 + $0x30] sm:$0xff]  ;;  %v409_v57 = vld [vmem:[%s1901_s19 + $0xb8] sm:$0xff] }
  0x25   : > { %v487_v33 = vld [vmem:[%s1907_s22 + $0x128] sm:$0xff]  ;;  %v519_v36 = vmul.f32 0.001, %v455_v32  ;;  %v1750_v45 = vpack.i.bf16 %v614_v30, %v582_v26  ;;  %v456_v50 = vld [vmem:[%s1907_s22 + $0x30] sm:$0xff]  ;;  %v505_v58 = vld [vmem:[%s1907_s22 + $0x1b8] sm:$0xff]  ;;  %v600_v61 = vadd.f32 %v536_v44, %v408_v41 }
  0x26   : > { %1747 = vxpose.xlu1.b32.cont [3/16] (narrow) %v1746_v1, 16  ;;  %v551_v37 = vmul.f32 0.001, %v487_v33  ;;  %1707 = vxpose.xlu0.b32.cont [4/16] (narrow) %v1706_v18, 16  ;;  %v488_v51 = vld [vmem:[%s1907_s22 + $0x130] sm:$0xff]  ;;  %v1710_v56 = vpack.i.bf16 %v631_v35, %v599_v34  ;;  %v632_v62 = vadd.f32 %v568_v48, %v440_v42  ;;  %v441_v63 = vld [vmem:[%s1901_s19 + $0x1b8] sm:$0xff] }
  0x27   : > { %v583_v46 = vadd.f32 %v519_v36, %v391_v29  ;;  %v424_v52 = vld [vmem:[%s1901_s19 + $0x130] sm:$0xff]  ;;  %v520_v53 = vmul.f32 0.001, %v456_v50  ;;  %v552_v54 = vmul.f32 0.001, %v488_v51  ;;  %v457_v1 = vld [vmem:[%s1907_s22 + $0x38] sm:$0xff] }
  0x28   : > { %v615_v47 = vadd.f32 %v551_v37, %v423_v31  ;;  %v537_v59 = vmul.f32 0.001, %v473_v55  ;;  %v569_v0 = vmul.f32 0.001, %v505_v58  ;;  %v489_v2 = vld [vmem:[%s1907_s22 + $0x138] sm:$0xff]  ;;  %v474_v9 = vld [vmem:[%s1907_s22 + $0xc0] sm:$0xff]  ;;  %v1712_v14 = vpack.i.bf16 %v632_v62, %v600_v61 }
  0x29   : > { %v584_v3 = vadd.f32 %v520_v53, %v392_v49  ;;  %v616_v4 = vadd.f32 %v552_v54, %v424_v52  ;;  %v393_v5 = vld [vmem:[%s1901_s19 + $0x38] sm:$0xff]  ;;  %v521_v6 = vmul.f32 0.001, %v457_v1  ;;  %v553_v7 = vmul.f32 0.001, %v489_v2  ;;  %v506_v10 = vld [vmem:[%s1907_s22 + $0x1c0] sm:$0xff] }
  0x2a   : > { %1749 = vxpose.xlu1.b32.cont [4/16] (narrow) %v1748_v25, 16  ;;  %1709 = vxpose.xlu0.b32.cont [5/16] (narrow) %v1708_v40, 16  ;;  %v1752_v60 = vpack.i.bf16 %v615_v47, %v583_v46  ;;  %v425_v8 = vld [vmem:[%s1901_s19 + $0x138] sm:$0xff]  ;;  %v538_v11 = vmul.f32 0.001, %v474_v9  ;;  %v458_v13 = vld [vmem:[%s1907_s22 + $0x40] sm:$0xff]  ;;  %v601_v15 = vadd.f32 %v537_v59, %v409_v57  ;;  %v633_v16 = vadd.f32 %v569_v0, %v441_v63 }
  0x2b   : > { %v570_v12 = vmul.f32 0.001, %v506_v10  ;;  %v410_v17 = vld [vmem:[%s1901_s19 + $0xc0] sm:$0xff]  ;;  %v522_v20 = vmul.f32 0.001, %v458_v13  ;;  %v1754_v21 = vpack.i.bf16 %v616_v4, %v584_v3  ;;  %v585_v22 = vadd.f32 %v521_v6, %v393_v5  ;;  %v475_v26 = vld [vmem:[%s1907_s22 + $0xc8] sm:$0xff] }
  0x2c   : > { %v442_v18 = vld [vmem:[%s1901_s19 + $0x1c0] sm:$0xff]  ;;  %v617_v23 = vadd.f32 %v553_v7, %v425_v8  ;;  %v507_v27 = vld [vmem:[%s1907_s22 + $0x1c8] sm:$0xff]  ;;  %v602_v31 = vadd.f32 %v538_v11, %v410_v17  ;;  %v539_v34 = vmul.f32 0.001, %v475_v26  ;;  %v1714_v37 = vpack.i.bf16 %v633_v16, %v601_v15  ;;  %v476_v46 = vld [vmem:[%s1907_s22 + $0xd0] sm:$0xff] }
  0x2d   : > { %v490_v19 = vld [vmem:[%s1907_s22 + $0x140] sm:$0xff]  ;;  %v411_v29 = vld [vmem:[%s1901_s19 + $0xc8] sm:$0xff]  ;;  %v634_v32 = vadd.f32 %v570_v12, %v442_v18  ;;  %v571_v35 = vmul.f32 0.001, %v507_v27  ;;  %v508_v47 = vld [vmem:[%s1907_s22 + $0x1d0] sm:$0xff] }
  0x2e   : > { %1751 = vxpose.xlu1.b32.cont [5/16] (narrow) %v1750_v45, 16  ;;  %1711 = vxpose.xlu0.b32.cont [6/16] (narrow) %v1710_v56, 16  ;;  %v394_v24 = vld [vmem:[%s1901_s19 + $0x40] sm:$0xff]  ;;  %v554_v25 = vmul.f32 0.001, %v490_v19  ;;  %v459_v30 = vld [vmem:[%s1907_s22 + $0x48] sm:$0xff]  ;;  %v1756_v42 = vpack.i.bf16 %v617_v23, %v585_v22  ;;  %v603_v51 = vadd.f32 %v539_v34, %v411_v29 }
  0x2f   : > { %v426_v28 = vld [vmem:[%s1901_s19 + $0x140] sm:$0xff]  ;;  %v443_v33 = vld [vmem:[%s1901_s19 + $0x1c8] sm:$0xff]  ;;  %v523_v40 = vmul.f32 0.001, %v459_v30  ;;  %v586_v43 = vadd.f32 %v522_v20, %v394_v24  ;;  %v460_v48 = vld [vmem:[%s1907_s22 + $0x50] sm:$0xff]  ;;  %v1716_v50 = vpack.i.bf16 %v634_v32, %v602_v31 }
  0x30   : > { %v491_v36 = vld [vmem:[%s1907_s22 + $0x148] sm:$0xff]  ;;  %v618_v44 = vadd.f32 %v554_v25, %v426_v28  ;;  %v492_v49 = vld [vmem:[%s1907_s22 + $0x150] sm:$0xff]  ;;  %v635_v52 = vadd.f32 %v571_v35, %v443_v33  ;;  %v540_v57 = vmul.f32 0.001, %v476_v46  ;;  %v572_v58 = vmul.f32 0.001, %v508_v47 }
  0x31   : > { %v395_v38 = vld [vmem:[%s1901_s19 + $0x48] sm:$0xff]  ;;  %v555_v41 = vmul.f32 0.001, %v491_v36  ;;  %v412_v53 = vld [vmem:[%s1901_s19 + $0xd0] sm:$0xff]  ;;  %v524_v62 = vmul.f32 0.001, %v460_v48 }
  0x32   : > { %1753 = vxpose.xlu1.b32.cont [6/16] (narrow) %v1752_v60, 16  ;;  %1713 = vxpose.xlu0.b32.cont [7/16] (narrow) %v1712_v14, 16  ;;  %v427_v45 = vld [vmem:[%s1901_s19 + $0x148] sm:$0xff]  ;;  %v444_v54 = vld [vmem:[%s1901_s19 + $0x1d0] sm:$0xff]  ;;  %v587_v55 = vadd.f32 %v523_v40, %v395_v38  ;;  %v477_v60 = vld [vmem:[%s1907_s22 + $0xd8] sm:$0xff]  ;;  %v1758_v61 = vpack.i.bf16 %v618_v44, %v586_v43  ;;  %v1718_v4 = vpack.i.bf16 %v635_v52, %v603_v51 }
  0x33   : > { %v619_v56 = vadd.f32 %v555_v41, %v427_v45  ;;  %v396_v59 = vld [vmem:[%s1901_s19 + $0x50] sm:$0xff]  ;;  %v556_v63 = vmul.f32 0.001, %v492_v49  ;;  %v509_v0 = vld [vmem:[%s1907_s22 + $0x1d8] sm:$0xff]  ;;  %v541_v6 = vmul.f32 0.001, %v477_v60  ;;  %v604_v8 = vadd.f32 %v540_v57, %v412_v53 }
  0x34   : > { %v428_v1 = vld [vmem:[%s1901_s19 + $0x150] sm:$0xff]  ;;  %v461_v2 = vld [vmem:[%s1907_s22 + $0x58] sm:$0xff]  ;;  %v636_v9 = vadd.f32 %v572_v58, %v444_v54  ;;  %v573_v11 = vmul.f32 0.001, %v509_v0  ;;  %v478_v12 = vld [vmem:[%s1907_s22 + $0xe0] sm:$0xff]  ;;  %v588_v14 = vadd.f32 %v524_v62, %v396_v59 }
  0x35   : > { %v493_v3 = vld [vmem:[%s1907_s22 + $0x158] sm:$0xff]  ;;  %v1760_v7 = vpack.i.bf16 %v619_v56, %v587_v55  ;;  %v510_v13 = vld [vmem:[%s1907_s22 + $0x1e0] sm:$0xff]  ;;  %v620_v15 = vadd.f32 %v556_v63, %v428_v1  ;;  %v525_v16 = vmul.f32 0.001, %v461_v2  ;;  %v542_v23 = vmul.f32 0.001, %v478_v12 }
  0x36   : > { %1755 = vxpose.xlu1.b32.cont [7/16] (narrow) %v1754_v21, 16  ;;  %1715 = vxpose.xlu0.b32.cont [8/16] (narrow) %v1714_v37, 16  ;;  %v413_v5 = vld [vmem:[%s1901_s19 + $0xd8] sm:$0xff]  ;;  %v557_v17 = vmul.f32 0.001, %v493_v3  ;;  %v462_v18 = vld [vmem:[%s1907_s22 + $0x60] sm:$0xff]  ;;  %v1720_v25 = vpack.i.bf16 %v636_v9, %v604_v8 }
  0x37   : > { %v445_v10 = vld [vmem:[%s1901_s19 + $0x1d8] sm:$0xff]  ;;  %v494_v21 = vld [vmem:[%s1907_s22 + $0x160] sm:$0xff]  ;;  %v574_v24 = vmul.f32 0.001, %v510_v13  ;;  %v605_v26 = vadd.f32 %v541_v6, %v413_v5  ;;  %v526_v29 = vmul.f32 0.001, %v462_v18  ;;  %v1762_v32 = vpack.i.bf16 %v620_v15, %v588_v14 }
  0x38   : > { %v397_v19 = vld [vmem:[%s1901_s19 + $0x58] sm:$0xff]  ;;  %v414_v22 = vld [vmem:[%s1901_s19 + $0xe0] sm:$0xff]  ;;  %v637_v27 = vadd.f32 %v573_v11, %v445_v10  ;;  %v479_v30 = vld [vmem:[%s1907_s22 + $0xe8] sm:$0xff]  ;;  %v558_v35 = vmul.f32 0.001, %v494_v21 }
  0x39   : > { %v429_v20 = vld [vmem:[%s1901_s19 + $0x158] sm:$0xff]  ;;  %v446_v28 = vld [vmem:[%s1901_s19 + $0x1e0] sm:$0xff]  ;;  %v511_v31 = vld [vmem:[%s1907_s22 + $0x1e8] sm:$0xff]  ;;  %v589_v33 = vadd.f32 %v525_v16, %v397_v19  ;;  %v543_v45 = vmul.f32 0.001, %v479_v30 }
  0x3a   : > { %1757 = vxpose.xlu1.b32.cont [8/16] (narrow) %v1756_v42, 16  ;;  %1717 = vxpose.xlu0.b32.cont [9/16] (narrow) %v1716_v50, 16  ;;  %v621_v34 = vadd.f32 %v557_v17, %v429_v20  ;;  %v463_v36 = vld [vmem:[%s1907_s22 + $0x68] sm:$0xff]  ;;  %v398_v38 = vld [vmem:[%s1901_s19 + $0x60] sm:$0xff]  ;;  %v606_v42 = vadd.f32 %v542_v23, %v414_v22  ;;  %v638_v43 = vadd.f32 %v574_v24, %v446_v28  ;;  %v575_v46 = vmul.f32 0.001, %v511_v31 }
  0x3b   : > { %v495_v37 = vld [vmem:[%s1907_s22 + $0x168] sm:$0xff]  ;;  %v430_v40 = vld [vmem:[%s1901_s19 + $0x160] sm:$0xff]  ;;  %v1722_v48 = vpack.i.bf16 %v637_v27, %v605_v26  ;;  %v527_v49 = vmul.f32 0.001, %v463_v36  ;;  %v480_v51 = vld [vmem:[%s1907_s22 + $0xf0] sm:$0xff]  ;;  %v590_v53 = vadd.f32 %v526_v29, %v398_v38 }
  0x3c   : > { %v415_v41 = vld [vmem:[%s1901_s19 + $0xe8] sm:$0xff]  ;;  %v559_v50 = vmul.f32 0.001, %v495_v37  ;;  %v1764_v52 = vpack.i.bf16 %v621_v34, %v589_v33  ;;  %v622_v54 = vadd.f32 %v558_v35, %v430_v40  ;;  %v512_v56 = vld [vmem:[%s1907_s22 + $0x1f0] sm:$0xff]  ;;  %v1724_v59 = vpack.i.bf16 %v638_v43, %v606_v42  ;;  %v481_v8 = vld [vmem:[%s1907_s22 + $0xf8] sm:$0xff] }
  0x3d   : > { %v447_v44 = vld [vmem:[%s1901_s19 + $0x1e8] sm:$0xff]  ;;  %v464_v57 = vld [vmem:[%s1907_s22 + $0x70] sm:$0xff]  ;;  %v607_v60 = vadd.f32 %v543_v45, %v415_v41  ;;  %v544_v63 = vmul.f32 0.001, %v480_v51  ;;  %v576_v3 = vmul.f32 0.001, %v512_v56 }
  0x3e   : > { %1759 = vxpose.xlu1.b32.cont [9/16] (narrow) %v1758_v61, 16  ;;  %1719 = vxpose.xlu0.b32.cont [10/16] (narrow) %v1718_v4, 16  ;;  %v399_v47 = vld [vmem:[%s1901_s19 + $0x68] sm:$0xff]  ;;  %v496_v58 = vld [vmem:[%s1907_s22 + $0x170] sm:$0xff]  ;;  %v639_v61 = vadd.f32 %v575_v46, %v447_v44  ;;  %v528_v4 = vmul.f32 0.001, %v464_v57  ;;  %v1766_v5 = vpack.i.bf16 %v622_v54, %v590_v53 }
  0x3f   : > { %v431_v55 = vld [vmem:[%s1901_s19 + $0x168] sm:$0xff]  ;;  %v416_v62 = vld [vmem:[%s1901_s19 + $0xf0] sm:$0xff]  ;;  %v591_v0 = vadd.f32 %v527_v49, %v399_v47  ;;  %v513_v9 = vld [vmem:[%s1907_s22 + $0x1f8] sm:$0xff]  ;;  %v545_v18 = vmul.f32 0.001, %v481_v8 }
  0x40   : > { %v623_v1 = vadd.f32 %v559_v50, %v431_v55  ;;  %v448_v2 = vld [vmem:[%s1901_s19 + $0x1f0] sm:$0xff]  ;;  %v465_v11 = vld [vmem:[%s1907_s22 + $0x78] sm:$0xff]  ;;  %v1726_v13 = vpack.i.bf16 %v639_v61, %v607_v60  ;;  %v608_v14 = vadd.f32 %v544_v63, %v416_v62  ;;  %v577_v19 = vmul.f32 0.001, %v513_v9  ;;  %v779_v35 = vld [vmem:[%s2250_s3 + $0x8] sm:$0xff] }
  0x41   : > { %v400_v6 = vld [vmem:[%s1901_s19 + $0x70] sm:$0xff]  ;;  %v497_v12 = vld [vmem:[%s1907_s22 + $0x178] sm:$0xff]  ;;  %v640_v16 = vadd.f32 %v576_v3, %v448_v2  ;;  %v529_v23 = vmul.f32 0.001, %v465_v11  ;;  %v778_v38 = vld [vmem:[%s2250_s3] sm:$0xff] }
  0x42   : > { %1761 = vxpose.xlu1.b32.cont [10/16] (narrow) %v1760_v7, 16  ;;  %1721 = vxpose.xlu0.b32.cont [11/16] (narrow) %v1720_v25, 16  ;;  %v560_v7 = vmul.f32 0.001, %v496_v58  ;;  %v432_v10 = vld [vmem:[%s1901_s19 + $0x170] sm:$0xff]  ;;  %v1768_v15 = vpack.i.bf16 %v623_v1, %v591_v0  ;;  %v417_v17 = vld [vmem:[%s1901_s19 + $0xf8] sm:$0xff]  ;;  %v592_v20 = vadd.f32 %v528_v4, %v400_v6 }
  0x43   : > { %v449_v22 = vld [vmem:[%s1901_s19 + $0x1f8] sm:$0xff]  ;;  %v561_v24 = vmul.f32 0.001, %v497_v12  ;;  %v1728_v27 = vpack.i.bf16 %v640_v16, %v608_v14  ;;  %v609_v28 = vadd.f32 %v545_v18, %v417_v17  ;;  %v780_v36 = vld [vmem:[%s2250_s3 + $0x10] sm:$0xff]  ;;  %v950_v40 = vld [vmem:[%s2252_s5] sm:$0xff] }
  0x44   : > { %v624_v21 = vadd.f32 %v560_v7, %v432_v10  ;;  %v401_v25 = vld [vmem:[%s1901_s19 + $0x78] sm:$0xff]  ;;  %v641_v29 = vadd.f32 %v577_v19, %v449_v22  ;;  %v1050_v41 = vld [vmem:[%s2254_s7] sm:$0xff]  ;;  %v1051_v42 = vld [vmem:[%s2254_s7 + $0x8] sm:$0xff] }
  0x45   : > { %v433_v26 = vld [vmem:[%s1901_s19 + $0x178] sm:$0xff]  ;;  %v593_v31 = vadd.f32 %v529_v23, %v401_v25  ;;  %v1052_v43 = vld [vmem:[%s2254_s7 + $0x10] sm:$0xff]  ;;  %v1236_v45 = vld [vmem:[%s2256_s9] sm:$0xff] }
  0x46   : > { %1763 = vxpose.xlu1.b32.cont [11/16] (narrow) %v1762_v32, 16  ;;  %1723 = vxpose.xlu0.b32.cont [12/16] (narrow) %v1722_v48, 16  ;;  %v1770_v30 = vpack.i.bf16 %v624_v21, %v592_v20  ;;  %v625_v32 = vadd.f32 %v561_v24, %v433_v26  ;;  %v1730_v33 = vpack.i.bf16 %v641_v29, %v609_v28  ;;  %v781_v37 = vld [vmem:[%s2250_s3 + $0x18] sm:$0xff]  ;;  %v1237_v46 = vld [vmem:[%s2256_s9 + $0x8] sm:$0xff]  ;;  %v1786_v63 = vld [vmem:[%s2249_s2] sm:$0xff]  }
  0x47   : > { %v1053_v44 = vld [vmem:[%s2254_s7 + $0x18] sm:$0xff]  ;;  %v1787_v0 = vld [vmem:[%s2249_s2 + $0x8] sm:$0xff]  }
  0x48   : > { %v1772_v34 = vpack.i.bf16 %v625_v32, %v593_v31 }
  0x4a   : > { %1765 = vxpose.xlu1.b32.cont [12/16] (narrow) %v1764_v52, 16  ;;  %1725 = vxpose.xlu0.b32.cont [13/16] (narrow) %v1724_v59, 16 }
  0x4e   : > { %1767 = vxpose.xlu1.b32.cont [13/16] (narrow) %v1766_v5, 16  ;;  %1727 = vxpose.xlu0.b32.cont [14/16] (narrow) %v1726_v13, 16 }
  0x52   : > { %1769 = vxpose.xlu1.b32.cont [14/16] (narrow) %v1768_v15, 16  ;;  %1729 = vxpose.xlu0.b32.cont [15/16] (narrow) %v1728_v27, 16 }
  0x56   : > { %1771 = vxpose.xlu1.b32.cont [15/16] (narrow) %v1770_v30, 16  ;;  %1731 = vxpose.xlu0.b32.end [16/16] (narrow) %v1730_v33, 16 }
  0x5a   : > { %1773 = vxpose.xlu1.b32.end [16/16] (narrow) %v1772_v34, 16 }
  0x78   : > { %1785 = vset.pattern.permute.xlu1 %v1831_v39 }
  0x79   : > { %789 = vperm.xlu1 %1785, %v779_v35  }
  0x7d   : > { %794 = vperm.xlu1 %1785, %v780_v36  }
  0x7f   : > { %1784 = vset.pattern.permute.xlu0 %v1831_v39 }
  0x80   : > { %784 = vperm.xlu0 %1784, %v778_v38  }
  0x81   : > { %799 = vperm.xlu1 %1785, %v781_v37  }
  0x84   : > { %1056 = vperm.xlu0 %1784, %v1050_v41  }
  0x85   : > { %953 = vperm.xlu1 %1785, %v950_v40  }
  0x88   : > { %1066 = vperm.xlu0 %1784, %v1052_v43  }
  0x89   : > { %1061 = vperm.xlu1 %1785, %v1051_v42  }
  0x8c   : > { %1240 = vperm.xlu0 %1784, %v1236_v45  }
  0x8d   : > { %1071 = vperm.xlu1 %1785, %v1053_v44  }
  0x91   : > { %1245 = vperm.xlu1 %1785, %v1237_v46  }
  0x9a   : > { %v1732_v47 = vpop.trf.xlu0 }
  0x9b   : > { %v1733_v50 = vunpack.i.l.bf16 %v1732_v47  ;;  %v1736_v51 = vunpack.i.h.bf16 %v1732_v47 }
  0x9e   : > { %v1774_v48 = vpop.trf.xlu1  ;;  %v1737_v49 = vpop.trf.xlu0 }
  0x9f   : > { %v1775_v52 = vunpack.i.l.bf16 %v1774_v48  ;;  %v1778_v53 = vunpack.i.h.bf16 %v1774_v48  ;;  %v1738_v55 = vunpack.i.l.bf16 %v1737_v49  ;;  %v1741_v56 = vunpack.i.h.bf16 %v1737_v49 }
  0xa1   : > { %v771_v59 = vpack.c.bf16 %v1738_v55, %v1733_v50  ;;  %v773_v60 = vpack.c.bf16 %v1741_v56, %v1736_v51 }
  0xa2   : > { %v1779_v54 = vpop.trf.xlu1 }
  0xa3   : > { %v1780_v57 = vunpack.i.l.bf16 %v1779_v54  ;;  %v1783_v58 = vunpack.i.h.bf16 %v1779_v54  ;;  %819 = vmatprep.subr.bf16.mxu0 %v771_v59  ;;  %872 = vmatprep.subr.bf16.mxu1 %v773_v60 }
  0xa5   : > { %v770_v61 = vpack.c.bf16 %v1780_v57, %v1775_v52  ;;  %v772_v62 = vpack.c.bf16 %v1783_v58, %v1778_v53 }
  0xa7   : > { %820 = vmatpush1.bf16.msra.mxu0 %v770_v61  ;;  %873 = vmatpush1.bf16.msra.mxu1 %v772_v62  ;;  %v949_v62 = vld [vmem:[%s2251_s4] sm:$0xf] }
  0xaa   : > { %1663 = vmatmul.mubr.msk.bf16.vlgmr.msra.gmra.mrb[0].mxu0 %vm812_vm0, %v1786_v63  ;;  %1665 = vmatmul.mubr.msk.bf16.vlgmr.msra.gmra.mrb[0].mxu1 %vm812_vm0, %v1786_v63 }
  0xab   : > { %861 = vmatprep.mubr.bf16.mxu0 %v1831_v39  ;;  %914 = vmatprep.mubr.bf16.mxu1 %v1831_v39 }
  0xb2   : > { %1664 = vmatmul.mubr.msk.bf16.gmra.mrb[4].mxu0 %vm812_vm0, %v1787_v0  ;;  %1666 = vmatmul.mubr.msk.bf16.gmra.mrb[4].mxu1 %vm812_vm0, %v1787_v0 }
  0xb3   : > { %992 = vmatprep.mubr.bf16.mxu0 %v1831_v39  ;;  %1033 = vmatprep.mubr.bf16.mxu1 %v1831_v39 }
  0xf8   : > { %v790_v1 = vpop.permute.xlu1 %789 }
  0xfc   : > { %v795_v2 = vpop.permute.xlu1 %794 }
  0xff   : > { %v785_v3 = vpop.permute.xlu0 %784 }
 0x100   : > { %v800_v28 = vpop.permute.xlu1 %799 }
 0x104   : > { %v954_v63 = vpop.permute.xlu1 %953 }
 0x17d   : > { %v853_v4 = vpop.f32.mrb[0].mxu0  ;;  %v906_v5 = vpop.f32.mrb[0].mxu1 }
 0x17e   : > { %v854_v6 = vadd.f32 %v853_v4, %v785_v3  ;;  %v907_v7 = vadd.f32 %v906_v5, %v785_v3  ;;  %v855_v8 = vpop.f32.mrb[1].mxu0  ;;  %v908_v9 = vpop.f32.mrb[1].mxu1 }
 0x17f   : > { %v856_v10 = vadd.f32 %v855_v8, %v785_v3  ;;  %v909_v11 = vadd.f32 %v908_v9, %v785_v3  ;;  %v857_v12 = vpop.f32.mrb[2].mxu0  ;;  %v910_v13 = vpop.f32.mrb[2].mxu1 }
 0x180   : > { %v927_v14 = vmax.f32 %v907_v7, 0.0  ;;  %v858_v15 = vadd.f32 %v857_v12, %v790_v1  ;;  %v911_v16 = vadd.f32 %v910_v13, %v790_v1  ;;  %v859_v17 = vpop.f32.mrb[3].mxu0  ;;  %v912_v18 = vpop.f32.mrb[3].mxu1  ;;  %v925_v22 = vmax.f32 %v854_v6, 0.0 }
 0x181   : > { %v928_v19 = vmax.f32 %v909_v11, 0.0  ;;  %v860_v20 = vadd.f32 %v859_v17, %v790_v1  ;;  %v913_v21 = vadd.f32 %v912_v18, %v790_v1  ;;  %v926_v25 = vmax.f32 %v856_v10, 0.0  ;;  %v1788_v18 = vld [vmem:[%s2253_s6] sm:$0xff]  }
 0x182   : > { %v929_v23 = vmax.f32 %v858_v15, 0.0  ;;  %v931_v24 = vmax.f32 %v911_v16, 0.0 }
 0x183   : > { %v930_v26 = vmax.f32 %v860_v20, 0.0  ;;  %v932_v27 = vmax.f32 %v913_v21, 0.0  ;;  %v1057_v20 = vpop.permute.xlu0 %1056  ;;  %v1062_v21 = vpop.permute.xlu1 %1061 }
 0x184   : > { %v941_v29 = vpack.c.bf16 %v929_v23, %v925_v22  ;;  %v943_v30 = vpack.c.bf16 %v931_v24, %v927_v14 }
 0x185   : > { %v942_v31 = vpack.c.bf16 %v930_v26, %v926_v25  ;;  %v944_v32 = vpack.c.bf16 %v932_v27, %v928_v19  ;;  %v863_v33 = vpop.f32.mrb[4].mxu0  ;;  %v916_v34 = vpop.f32.mrb[4].mxu1  ;;  %v1789_v19 = vld [vmem:[%s2253_s6 + $0x8] sm:$0xff]  }
 0x186   : > { %v864_v35 = vadd.f32 %v863_v33, %v795_v2  ;;  %v917_v36 = vadd.f32 %v916_v34, %v795_v2  ;;  %v865_v37 = vpop.f32.mrb[5].mxu0  ;;  %v918_v38 = vpop.f32.mrb[5].mxu1 }
 0x187   : > { %v866_v40 = vadd.f32 %v865_v37, %v795_v2  ;;  %v919_v41 = vadd.f32 %v918_v38, %v795_v2  ;;  %v867_v42 = vpop.f32.mrb[6].mxu0  ;;  %v920_v43 = vpop.f32.mrb[6].mxu1  ;;  %960 = vmatprep.subr.bf16.mxu0 %v942_v31  ;;  %1001 = vmatprep.subr.bf16.mxu1 %v944_v32 }
 0x188   : > { %v868_v44 = vadd.f32 %v867_v42, %v800_v28  ;;  %v921_v45 = vadd.f32 %v920_v43, %v800_v28  ;;  %v869_v46 = vpop.f32.mrb[7].mxu0  ;;  %v922_v47 = vpop.f32.mrb[7].mxu1  ;;  %961 = vmatpush1.bf16.msra.mxu0 %v941_v29  ;;  %1002 = vmatpush1.bf16.msra.mxu1 %v943_v30  ;;  %v933_v50 = vmax.f32 %v864_v35, 0.0  ;;  %v935_v51 = vmax.f32 %v917_v36, 0.0 }
 0x189   : > { %v870_v48 = vadd.f32 %v869_v46, %v800_v28  ;;  %v923_v49 = vadd.f32 %v922_v47, %v800_v28  ;;  %v934_v54 = vmax.f32 %v866_v40, 0.0  ;;  %v936_v55 = vmax.f32 %v919_v41, 0.0  ;;  %v1067_v46 = vpop.permute.xlu0 %1066  ;;  %v1072_v47 = vpop.permute.xlu1 %1071 }
 0x18a   : > { %v937_v52 = vmax.f32 %v868_v44, 0.0  ;;  %v939_v53 = vmax.f32 %v921_v45, 0.0 }
 0x18b   : > { %v938_v56 = vmax.f32 %v870_v48, 0.0  ;;  %v940_v57 = vmax.f32 %v923_v49, 0.0 }
 0x18c   : > { %v945_v58 = vpack.c.bf16 %v937_v52, %v933_v50  ;;  %v947_v59 = vpack.c.bf16 %v939_v53, %v935_v51 }
 0x18d   : > { %v946_v60 = vpack.c.bf16 %v938_v56, %v934_v54  ;;  %v948_v61 = vpack.c.bf16 %v940_v57, %v936_v55 }
 0x18f   : > { %962 = vmatprep.subr.bf16.mxu0 %v946_v60  ;;  %1003 = vmatprep.subr.bf16.mxu1 %v948_v61 }
 0x190   : > { %963 = vmatpush1.bf16.msra.mxu0 %v945_v58  ;;  %1004 = vmatpush1.bf16.msra.mxu1 %v947_v59 }
 0x193   : > { %1667 = vmatmul.mubr.msk.bf16.vlgmr.msra.gmra.mrb[8].mxu0 %vm956_vm1, %v949_v62  ;;  %1668 = vmatmul.mubr.msk.bf16.vlgmr.msra.gmra.mrb[8].mxu1 %vm956_vm1, %v949_v62 }
 0x194   : > { %1136 = vmatprep.mubr.bf16.mxu0 %v1831_v39  ;;  %1189 = vmatprep.mubr.bf16.mxu1 %v1831_v39 }
 0x266   : > { %v994_v0 = vpop.f32.mrb[8].mxu0  ;;  %v1035_v1 = vpop.f32.mrb[8].mxu1 }
 0x267   : > { %v995_v2 = vadd.f32 %v994_v0, %v954_v63  ;;  %v1036_v3 = vadd.f32 %v1035_v1, %v954_v63  ;;  %v996_v4 = vpop.f32.mrb[9].mxu0  ;;  %v1037_v5 = vpop.f32.mrb[9].mxu1 }
 0x268   : > { %v997_v6 = vadd.f32 %v996_v4, %v954_v63  ;;  %v1038_v7 = vadd.f32 %v1037_v5, %v954_v63  ;;  %v998_v8 = vpop.f32.mrb[10].mxu0  ;;  %v1039_v9 = vpop.f32.mrb[10].mxu1 }
 0x269   : > { %v1046_v10 = vpack.c.bf16 %v995_v2, %v995_v2  ;;  %v1048_v11 = vpack.c.bf16 %v1036_v3, %v1036_v3  ;;  %v999_v12 = vpop.f32.mrb[11].mxu0  ;;  %v1040_v13 = vpop.f32.mrb[11].mxu1 }
 0x26a   : > { %v1047_v14 = vpack.c.bf16 %v997_v6, %v997_v6  ;;  %v1049_v15 = vpack.c.bf16 %v1038_v7, %v1038_v7 }
 0x26b   : > { %v1093_v16 = vsel %vm1091_vm2, %v1046_v10, 0  ;;  %v1099_v17 = vsel %vm1091_vm2, %v1048_v11, 0 }
 0x26c   : > { %1671 = vmatprep.subr.msk.bf16.mxu0 %vm1091_vm2, %v1047_v14  ;;  %1674 = vmatprep.subr.msk.bf16.mxu1 %vm1091_vm2, %v1049_v15 }
 0x26d   : > { %1105 = vmatpush1.bf16.msra.mxu0 %v1093_v16  ;;  %1158 = vmatpush1.bf16.msra.mxu1 %v1099_v17  ;;  %v1790_v16 = vld [vmem:[%s2255_s8] sm:$0xff]   ;;  %v1241_v17 = vpop.permute.xlu0 %1240 }
 0x270   : > { %1672 = vmatmul.mubr.msk.bf16.vlgmr.msra.gmra.mrb[12].mxu0 %vm1084_vm3, %v1788_v18  ;;  %1675 = vmatmul.mubr.msk.bf16.vlgmr.msra.gmra.mrb[12].mxu1 %vm1084_vm3, %v1788_v18  ;;  %v1246_v18 = vpop.permute.xlu1 %1245 }
 0x271   : > { %1146 = vmatprep.mubr.bf16.mxu0 %v1831_v39  ;;  %1199 = vmatprep.mubr.bf16.mxu1 %v1831_v39 }
 0x278   : > { %1673 = vmatmul.mubr.msk.bf16.gmra.mrb[16].mxu0 %vm1084_vm3, %v1789_v19  ;;  %1676 = vmatmul.mubr.msk.bf16.gmra.mrb[16].mxu1 %vm1084_vm3, %v1789_v19 }
 0x279   : > { %1288 = vmatprep.mubr.bf16.mxu0 %v1831_v39  ;;  %1331 = vmatprep.mubr.bf16.mxu1 %v1831_v39 }
 0x343   : > { %v1138_v22 = vpop.f32.mrb[12].mxu0  ;;  %v1191_v23 = vpop.f32.mrb[12].mxu1 }
 0x344   : > { %v1139_v24 = vadd.f32 %v1138_v22, %v1057_v20  ;;  %v1192_v25 = vadd.f32 %v1191_v23, %v1057_v20  ;;  %v1140_v26 = vpop.f32.mrb[13].mxu0  ;;  %v1193_v27 = vpop.f32.mrb[13].mxu1 }
 0x345   : > { %v1141_v28 = vadd.f32 %v1140_v26, %v1057_v20  ;;  %v1194_v29 = vadd.f32 %v1193_v27, %v1057_v20  ;;  %v1142_v30 = vpop.f32.mrb[14].mxu0  ;;  %v1195_v31 = vpop.f32.mrb[14].mxu1 }
 0x346   : > { %v1143_v32 = vadd.f32 %v1142_v30, %v1062_v21  ;;  %v1196_v33 = vadd.f32 %v1195_v31, %v1062_v21  ;;  %v1144_v34 = vpop.f32.mrb[15].mxu0  ;;  %v1197_v35 = vpop.f32.mrb[15].mxu1  ;;  %v1210_v38 = vmax.f32 %v1139_v24, 0.0  ;;  %v1212_v39 = vmax.f32 %v1192_v25, 0.0 }
 0x347   : > { %v1145_v36 = vadd.f32 %v1144_v34, %v1062_v21  ;;  %v1198_v37 = vadd.f32 %v1197_v35, %v1062_v21  ;;  %v1211_v42 = vmax.f32 %v1141_v28, 0.0  ;;  %v1213_v43 = vmax.f32 %v1194_v29, 0.0 }
 0x348   : > { %v1214_v40 = vmax.f32 %v1143_v32, 0.0  ;;  %v1216_v41 = vmax.f32 %v1196_v33, 0.0 }
 0x349   : > { %v1215_v44 = vmax.f32 %v1145_v36, 0.0  ;;  %v1217_v45 = vmax.f32 %v1198_v37, 0.0 }
 0x34a   : > { %v1226_v48 = vpack.c.bf16 %v1214_v40, %v1210_v38  ;;  %v1228_v49 = vpack.c.bf16 %v1216_v41, %v1212_v39 }
 0x34b   : > { %v1227_v50 = vpack.c.bf16 %v1215_v44, %v1211_v42  ;;  %v1229_v51 = vpack.c.bf16 %v1217_v45, %v1213_v43  ;;  %v1148_v52 = vpop.f32.mrb[16].mxu0  ;;  %v1201_v53 = vpop.f32.mrb[16].mxu1 }
 0x34c   : > { %v1149_v54 = vadd.f32 %v1148_v52, %v1067_v46  ;;  %v1202_v55 = vadd.f32 %v1201_v53, %v1067_v46  ;;  %v1150_v56 = vpop.f32.mrb[17].mxu0  ;;  %v1203_v57 = vpop.f32.mrb[17].mxu1 }
 0x34d   : > { %v1151_v58 = vadd.f32 %v1150_v56, %v1067_v46  ;;  %v1204_v59 = vadd.f32 %v1203_v57, %v1067_v46  ;;  %v1152_v60 = vpop.f32.mrb[18].mxu0  ;;  %v1205_v61 = vpop.f32.mrb[18].mxu1  ;;  %1256 = vmatprep.subr.bf16.mxu0 %v1227_v50  ;;  %1299 = vmatprep.subr.bf16.mxu1 %v1229_v51 }
 0x34e   : > { %v1153_v62 = vadd.f32 %v1152_v60, %v1072_v47  ;;  %v1206_v63 = vadd.f32 %v1205_v61, %v1072_v47  ;;  %v1154_v0 = vpop.f32.mrb[19].mxu0  ;;  %v1207_v1 = vpop.f32.mrb[19].mxu1  ;;  %1257 = vmatpush1.bf16.msra.mxu0 %v1226_v48  ;;  %1300 = vmatpush1.bf16.msra.mxu1 %v1228_v49  ;;  %v1218_v4 = vmax.f32 %v1149_v54, 0.0  ;;  %v1220_v5 = vmax.f32 %v1202_v55, 0.0 }
 0x34f   : > { %v1155_v2 = vadd.f32 %v1154_v0, %v1072_v47  ;;  %v1208_v3 = vadd.f32 %v1207_v1, %v1072_v47  ;;  %v1219_v8 = vmax.f32 %v1151_v58, 0.0  ;;  %v1221_v9 = vmax.f32 %v1204_v59, 0.0 }
 0x350   : > { %v1222_v6 = vmax.f32 %v1153_v62, 0.0  ;;  %v1224_v7 = vmax.f32 %v1206_v63, 0.0 }
 0x351   : > { %v1223_v10 = vmax.f32 %v1155_v2, 0.0  ;;  %v1225_v11 = vmax.f32 %v1208_v3, 0.0 }
 0x352   : > { %v1230_v12 = vpack.c.bf16 %v1222_v6, %v1218_v4  ;;  %v1232_v13 = vpack.c.bf16 %v1224_v7, %v1220_v5 }
 0x353   : > { %v1231_v14 = vpack.c.bf16 %v1223_v10, %v1219_v8  ;;  %v1233_v15 = vpack.c.bf16 %v1225_v11, %v1221_v9 }
 0x355   : > { %1258 = vmatprep.subr.bf16.mxu0 %v1231_v14  ;;  %1301 = vmatprep.subr.bf16.mxu1 %v1233_v15 }
 0x356   : > { %1259 = vmatpush1.bf16.msra.mxu0 %v1230_v12  ;;  %1302 = vmatpush1.bf16.msra.mxu1 %v1232_v13 }
 0x359   : > { %1678 = vmatmul.mubr.msk.bf16.vlgmr.msra.gmra.mrb[20].mxu0 %vm956_vm1, %v1790_v16  ;;  %1679 = vmatmul.mubr.msk.bf16.vlgmr.msra.gmra.mrb[20].mxu1 %vm956_vm1, %v1790_v16 }
 0x42c   : > { %v1290_v19 = vpop.f32.mrb[20].mxu0  ;;  %v1333_v20 = vpop.f32.mrb[20].mxu1 }
 0x42d   : > { %v1291_v21 = vadd.f32 %v1290_v19, %v1241_v17  ;;  %v1292_v22 = vpop.f32.mrb[21].mxu0  ;;  %v1335_v23 = vpop.f32.mrb[21].mxu1  ;;  %v1334_v47 = vadd.f32 %v1333_v20, %v1241_v17 }
 0x42e   : > { %v1293_v24 = vadd.f32 %v1292_v22, %v1241_v17  ;;  %v1294_v25 = vpop.f32.mrb[22].mxu0  ;;  %v1337_v26 = vpop.f32.mrb[22].mxu1  ;;  %v1336_v48 = vadd.f32 %v1335_v23, %v1241_v17 }
 0x42f   : > { %v1680_v27 = vmul.f32 -1.442695, %v1291_v21  ;;  %v1295_v28 = vadd.f32 %v1294_v25, %v1246_v18  ;;  %v1296_v29 = vpop.f32.mrb[23].mxu0  ;;  %v1339_v30 = vpop.f32.mrb[23].mxu1  ;;  %v1682_v49 = vmul.f32 -1.442695, %v1334_v47  ;;  %v1338_v50 = vadd.f32 %v1337_v26, %v1246_v18 }
 0x430   : > { %v1681_v31 = vmul.f32 -1.442695, %v1293_v24  ;;  %v1297_v32 = vadd.f32 %v1296_v29, %v1246_v18  ;;  %v1683_v51 = vmul.f32 -1.442695, %v1336_v48  ;;  %v1340_v52 = vadd.f32 %v1339_v30, %v1246_v18 }
 0x431   : > { %1791 = vpow2.f32 %v1680_v27  ;;  %v1684_v33 = vmul.f32 -1.442695, %v1295_v28  ;;  %v1686_v53 = vmul.f32 -1.442695, %v1338_v50 }
 0x432   : > { %1793 = vpow2.f32 %v1681_v31  ;;  %v1685_v34 = vmul.f32 -1.442695, %v1297_v32  ;;  %v1687_v54 = vmul.f32 -1.442695, %v1340_v52 }
 0x433   : > { %1795 = vpow2.f32 %v1684_v33 }
 0x434   : > { %1797 = vpow2.f32 %v1685_v34 }
 0x43b   : > { %v1792_v35 = vpop.eup %1791 }
 0x43c   : > { %v1366_v36 = vadd.f32 1.0, %v1792_v35  ;;  %v1794_v37 = vpop.eup %1793 }
 0x43d   : > { %v1367_v38 = vadd.f32 1.0, %v1794_v37  ;;  %v1796_v39 = vpop.eup %1795 }
 0x43e   : > { %1799 = vrcp.f32 %v1366_v36  ;;  %v1370_v40 = vadd.f32 1.0, %v1796_v39  ;;  %v1798_v41 = vpop.eup %1797 }
 0x43f   : > { %1801 = vrcp.f32 %v1367_v38  ;;  %v1371_v42 = vadd.f32 1.0, %v1798_v41 }
 0x440   : > { %1803 = vrcp.f32 %v1370_v40 }
 0x441   : > { %1805 = vrcp.f32 %v1371_v42 }
 0x442   : > { %1807 = vpow2.f32 %v1682_v49 }
 0x443   : > { %1809 = vpow2.f32 %v1683_v51 }
 0x444   : > { %1811 = vpow2.f32 %v1686_v53 }
 0x445   : > { %1813 = vpow2.f32 %v1687_v54 }
 0x448   : > { %v1800_v43 = vpop.eup %1799 }
 0x449   : > { %1390 = vxpose.xlu0.b32.start [1/2] (short) %v1800_v43, 128  ;;  %v1802_v44 = vpop.eup %1801 }
 0x44a   : > { %1422 = vxpose.xlu1.b32.start [1/2] (short) %v1802_v44, 128  ;;  %v1804_v45 = vpop.eup %1803 }
 0x44b   : > { %v1806_v46 = vpop.eup %1805 }
 0x44c   : > { %v1808_v55 = vpop.eup %1807 }
 0x44d   : > { %1391 = vxpose.xlu0.b32.end [2/2] (short) %v1804_v45, 128  ;;  %v1810_v56 = vpop.eup %1809  ;;  %v1368_v57 = vadd.f32 1.0, %v1808_v55 }
 0x44e   : > { %1423 = vxpose.xlu1.b32.end [2/2] (short) %v1806_v46, 128  ;;  %v1812_v58 = vpop.eup %1811  ;;  %v1369_v59 = vadd.f32 1.0, %v1810_v56 }
 0x44f   : > { %v1814_v60 = vpop.eup %1813  ;;  %1815 = vrcp.f32 %v1368_v57  ;;  %v1372_v61 = vadd.f32 1.0, %v1812_v58 }
 0x450   : > { %1817 = vrcp.f32 %v1369_v59  ;;  %v1373_v62 = vadd.f32 1.0, %v1814_v60 }
 0x451   : > { %1819 = vrcp.f32 %v1372_v61 }
 0x452   : > { %1821 = vrcp.f32 %v1373_v62 }
 0x459   : > { %v1816_v63 = vpop.eup %1815 }
 0x45a   : > { %v1818_v0 = vpop.eup %1817 }
 0x45b   : > { %v1820_v1 = vpop.eup %1819 }
 0x45c   : > { %v1822_v2 = vpop.eup %1821 }
 0x486   : > { %1454 = vxpose.xlu0.b32.start [1/2] (short) %v1816_v63, 128 }
 0x487   : > { %1486 = vxpose.xlu1.b32.start [1/2] (short) %v1818_v0, 128 }
 0x48a   : > { %1455 = vxpose.xlu0.b32.end [2/2] (short) %v1820_v1, 128 }
 0x48b   : > { %1487 = vxpose.xlu1.b32.end [2/2] (short) %v1822_v2, 128 }
 0x4c9   : > { %v1406_v3 = vpop.trf.xlu0 }
 0x4ca   : > { %1518 = vst.msk [vmem:[%s2114_s23] sm:$0xff] %vm812_vm0, %v1406_v3  ;;  %v1438_v4 = vpop.trf.xlu1 }
 0x4cb   : > { %1534 = vst.msk [vmem:[%s2114_s23 + $0x80] sm:$0xff] %vm812_vm0, %v1438_v4 }
 0x4cd   : > { %v1407_v5 = vpop.trf.xlu0 }
 0x4ce   : > { %1519 = vst.msk [vmem:[%s2114_s23 + $0x8] sm:$0xff] %vm812_vm0, %v1407_v5  ;;  %v1439_v6 = vpop.trf.xlu1 }
 0x4cf   : > { %1535 = vst.msk [vmem:[%s2114_s23 + $0x88] sm:$0xff] %vm812_vm0, %v1439_v6 }
 0x4d1   : > { %v1408_v7 = vpop.trf.xlu0 }
 0x4d2   : > { %1520 = vst.msk [vmem:[%s2114_s23 + $0x10] sm:$0xff] %vm812_vm0, %v1408_v7  ;;  %v1440_v8 = vpop.trf.xlu1 }
 0x4d3   : > { %1536 = vst.msk [vmem:[%s2114_s23 + $0x90] sm:$0xff] %vm812_vm0, %v1440_v8 }
 0x4d5   : > { %v1409_v9 = vpop.trf.xlu0 }
 0x4d6   : > { %1521 = vst.msk [vmem:[%s2114_s23 + $0x18] sm:$0xff] %vm812_vm0, %v1409_v9  ;;  %v1441_v10 = vpop.trf.xlu1 }
 0x4d7   : > { %1537 = vst.msk [vmem:[%s2114_s23 + $0x98] sm:$0xff] %vm812_vm0, %v1441_v10 }
 0x4d9   : > { %v1410_v11 = vpop.trf.xlu0 }
 0x4da   : > { %1522 = vst.msk [vmem:[%s2114_s23 + $0x20] sm:$0xff] %vm812_vm0, %v1410_v11  ;;  %v1442_v12 = vpop.trf.xlu1 }
 0x4db   : > { %1538 = vst.msk [vmem:[%s2114_s23 + $0xa0] sm:$0xff] %vm812_vm0, %v1442_v12 }
 0x4dd   : > { %v1411_v13 = vpop.trf.xlu0 }
 0x4de   : > { %1523 = vst.msk [vmem:[%s2114_s23 + $0x28] sm:$0xff] %vm812_vm0, %v1411_v13  ;;  %v1443_v14 = vpop.trf.xlu1 }
 0x4df   : > { %1539 = vst.msk [vmem:[%s2114_s23 + $0xa8] sm:$0xff] %vm812_vm0, %v1443_v14 }
 0x4e1   : > { %v1412_v15 = vpop.trf.xlu0 }
 0x4e2   : > { %1524 = vst.msk [vmem:[%s2114_s23 + $0x30] sm:$0xff] %vm812_vm0, %v1412_v15  ;;  %v1444_v16 = vpop.trf.xlu1 }
 0x4e3   : > { %1540 = vst.msk [vmem:[%s2114_s23 + $0xb0] sm:$0xff] %vm812_vm0, %v1444_v16 }
 0x4e5   : > { %v1413_v17 = vpop.trf.xlu0 }
 0x4e6   : > { %1525 = vst.msk [vmem:[%s2114_s23 + $0x38] sm:$0xff] %vm812_vm0, %v1413_v17  ;;  %v1445_v18 = vpop.trf.xlu1 }
 0x4e7   : > { %1541 = vst.msk [vmem:[%s2114_s23 + $0xb8] sm:$0xff] %vm812_vm0, %v1445_v18 }
 0x4e9   : > { %v1414_v19 = vpop.trf.xlu0 }
 0x4ea   : > { %1526 = vst.msk [vmem:[%s2114_s23 + $0x40] sm:$0xff] %vm812_vm0, %v1414_v19  ;;  %v1446_v20 = vpop.trf.xlu1 }
 0x4eb   : > { %1542 = vst.msk [vmem:[%s2114_s23 + $0xc0] sm:$0xff] %vm812_vm0, %v1446_v20 }
 0x4ed   : > { %v1415_v21 = vpop.trf.xlu0 }
 0x4ee   : > { %1527 = vst.msk [vmem:[%s2114_s23 + $0x48] sm:$0xff] %vm812_vm0, %v1415_v21  ;;  %v1447_v22 = vpop.trf.xlu1 }
 0x4ef   : > { %1543 = vst.msk [vmem:[%s2114_s23 + $0xc8] sm:$0xff] %vm812_vm0, %v1447_v22 }
 0x4f1   : > { %v1416_v23 = vpop.trf.xlu0 }
 0x4f2   : > { %1528 = vst.msk [vmem:[%s2114_s23 + $0x50] sm:$0xff] %vm812_vm0, %v1416_v23  ;;  %v1448_v24 = vpop.trf.xlu1 }
 0x4f3   : > { %1544 = vst.msk [vmem:[%s2114_s23 + $0xd0] sm:$0xff] %vm812_vm0, %v1448_v24 }
 0x4f5   : > { %v1417_v25 = vpop.trf.xlu0 }
 0x4f6   : > { %1529 = vst.msk [vmem:[%s2114_s23 + $0x58] sm:$0xff] %vm812_vm0, %v1417_v25  ;;  %v1449_v26 = vpop.trf.xlu1 }
 0x4f7   : > { %1545 = vst.msk [vmem:[%s2114_s23 + $0xd8] sm:$0xff] %vm812_vm0, %v1449_v26 }
 0x4f9   : > { %v1418_v27 = vpop.trf.xlu0 }
 0x4fa   : > { %1530 = vst.msk [vmem:[%s2114_s23 + $0x60] sm:$0xff] %vm812_vm0, %v1418_v27  ;;  %v1450_v28 = vpop.trf.xlu1 }
 0x4fb   : > { %1546 = vst.msk [vmem:[%s2114_s23 + $0xe0] sm:$0xff] %vm812_vm0, %v1450_v28 }
 0x4fd   : > { %v1419_v29 = vpop.trf.xlu0 }
 0x4fe   : > { %1531 = vst.msk [vmem:[%s2114_s23 + $0x68] sm:$0xff] %vm812_vm0, %v1419_v29  ;;  %v1451_v30 = vpop.trf.xlu1 }
 0x4ff   : > { %1547 = vst.msk [vmem:[%s2114_s23 + $0xe8] sm:$0xff] %vm812_vm0, %v1451_v30 }
 0x501   : > { %v1420_v31 = vpop.trf.xlu0 }
 0x502   : > { %1532 = vst.msk [vmem:[%s2114_s23 + $0x70] sm:$0xff] %vm812_vm0, %v1420_v31  ;;  %v1452_v32 = vpop.trf.xlu1 }
 0x503   : > { %1548 = vst.msk [vmem:[%s2114_s23 + $0xf0] sm:$0xff] %vm812_vm0, %v1452_v32 }
 0x505   : > { %v1421_v33 = vpop.trf.xlu0 }
 0x506   : > { %1533 = vst.msk [vmem:[%s2114_s23 + $0x78] sm:$0xff] %vm812_vm0, %v1421_v33  ;;  %v1453_v34 = vpop.trf.xlu1 }
 0x507   : > { %1549 = vst.msk [vmem:[%s2114_s23 + $0xf8] sm:$0xff] %vm812_vm0, %v1453_v34 }
 0x509   : > { %v1470_v35 = vpop.trf.xlu0 }
 0x50a   : > { %1550 = vst.msk [vmem:[%s2114_s23 + $0x100] sm:$0xff] %vm812_vm0, %v1470_v35  ;;  %v1502_v36 = vpop.trf.xlu1 }
 0x50b   : > { %1566 = vst.msk [vmem:[%s2114_s23 + $0x180] sm:$0xff] %vm812_vm0, %v1502_v36 }
 0x50d   : > { %v1471_v37 = vpop.trf.xlu0 }
 0x50e   : > { %1551 = vst.msk [vmem:[%s2114_s23 + $0x108] sm:$0xff] %vm812_vm0, %v1471_v37  ;;  %v1503_v38 = vpop.trf.xlu1 }
 0x50f   : > { %1567 = vst.msk [vmem:[%s2114_s23 + $0x188] sm:$0xff] %vm812_vm0, %v1503_v38 }
 0x511   : > { %v1472_v39 = vpop.trf.xlu0 }
 0x512   : > { %1552 = vst.msk [vmem:[%s2114_s23 + $0x110] sm:$0xff] %vm812_vm0, %v1472_v39  ;;  %v1504_v40 = vpop.trf.xlu1 }
 0x513   : > { %1568 = vst.msk [vmem:[%s2114_s23 + $0x190] sm:$0xff] %vm812_vm0, %v1504_v40 }
 0x515   : > { %v1473_v41 = vpop.trf.xlu0 }
 0x516   : > { %1553 = vst.msk [vmem:[%s2114_s23 + $0x118] sm:$0xff] %vm812_vm0, %v1473_v41  ;;  %v1505_v42 = vpop.trf.xlu1 }
 0x517   : > { %1569 = vst.msk [vmem:[%s2114_s23 + $0x198] sm:$0xff] %vm812_vm0, %v1505_v42 }
 0x519   : > { %v1474_v43 = vpop.trf.xlu0 }
 0x51a   : > { %1554 = vst.msk [vmem:[%s2114_s23 + $0x120] sm:$0xff] %vm812_vm0, %v1474_v43  ;;  %v1506_v44 = vpop.trf.xlu1 }
 0x51b   : > { %1570 = vst.msk [vmem:[%s2114_s23 + $0x1a0] sm:$0xff] %vm812_vm0, %v1506_v44 }
 0x51d   : > { %v1475_v45 = vpop.trf.xlu0 }
 0x51e   : > { %1555 = vst.msk [vmem:[%s2114_s23 + $0x128] sm:$0xff] %vm812_vm0, %v1475_v45  ;;  %v1507_v46 = vpop.trf.xlu1 }
 0x51f   : > { %1571 = vst.msk [vmem:[%s2114_s23 + $0x1a8] sm:$0xff] %vm812_vm0, %v1507_v46 }
 0x521   : > { %v1476_v47 = vpop.trf.xlu0 }
 0x522   : > { %1556 = vst.msk [vmem:[%s2114_s23 + $0x130] sm:$0xff] %vm812_vm0, %v1476_v47  ;;  %v1508_v48 = vpop.trf.xlu1 }
 0x523   : > { %1572 = vst.msk [vmem:[%s2114_s23 + $0x1b0] sm:$0xff] %vm812_vm0, %v1508_v48 }
 0x525   : > { %v1477_v49 = vpop.trf.xlu0 }
 0x526   : > { %1557 = vst.msk [vmem:[%s2114_s23 + $0x138] sm:$0xff] %vm812_vm0, %v1477_v49  ;;  %v1509_v50 = vpop.trf.xlu1 }
 0x527   : > { %1573 = vst.msk [vmem:[%s2114_s23 + $0x1b8] sm:$0xff] %vm812_vm0, %v1509_v50 }
 0x529   : > { %v1478_v51 = vpop.trf.xlu0 }
 0x52a   : > { %1558 = vst.msk [vmem:[%s2114_s23 + $0x140] sm:$0xff] %vm812_vm0, %v1478_v51  ;;  %v1510_v52 = vpop.trf.xlu1 }
 0x52b   : > { %1574 = vst.msk [vmem:[%s2114_s23 + $0x1c0] sm:$0xff] %vm812_vm0, %v1510_v52 }
 0x52d   : > { %v1479_v53 = vpop.trf.xlu0 }
 0x52e   : > { %1559 = vst.msk [vmem:[%s2114_s23 + $0x148] sm:$0xff] %vm812_vm0, %v1479_v53  ;;  %v1511_v54 = vpop.trf.xlu1 }
 0x52f   : > { %1575 = vst.msk [vmem:[%s2114_s23 + $0x1c8] sm:$0xff] %vm812_vm0, %v1511_v54 }
 0x531   : > { %v1480_v55 = vpop.trf.xlu0 }
 0x532   : > { %1560 = vst.msk [vmem:[%s2114_s23 + $0x150] sm:$0xff] %vm812_vm0, %v1480_v55  ;;  %v1512_v56 = vpop.trf.xlu1 }
 0x533   : > { %1576 = vst.msk [vmem:[%s2114_s23 + $0x1d0] sm:$0xff] %vm812_vm0, %v1512_v56 }
 0x535   : > { %v1481_v57 = vpop.trf.xlu0 }
 0x536   : > { %1561 = vst.msk [vmem:[%s2114_s23 + $0x158] sm:$0xff] %vm812_vm0, %v1481_v57  ;;  %v1513_v58 = vpop.trf.xlu1 }
 0x537   : > { %1577 = vst.msk [vmem:[%s2114_s23 + $0x1d8] sm:$0xff] %vm812_vm0, %v1513_v58 }
 0x539   : > { %v1482_v59 = vpop.trf.xlu0 }
 0x53a   : > { %1562 = vst.msk [vmem:[%s2114_s23 + $0x160] sm:$0xff] %vm812_vm0, %v1482_v59  ;;  %v1514_v60 = vpop.trf.xlu1 }
 0x53b   : > { %1578 = vst.msk [vmem:[%s2114_s23 + $0x1e0] sm:$0xff] %vm812_vm0, %v1514_v60 }
 0x53d   : > { %v1483_v61 = vpop.trf.xlu0 }
 0x53e   : > { %1563 = vst.msk [vmem:[%s2114_s23 + $0x168] sm:$0xff] %vm812_vm0, %v1483_v61  ;;  %v1515_v62 = vpop.trf.xlu1 }
 0x53f   : > { %1579 = vst.msk [vmem:[%s2114_s23 + $0x1e8] sm:$0xff] %vm812_vm0, %v1515_v62 }
 0x541   : > { %v1484_v63 = vpop.trf.xlu0 }
 0x542   : > { %1564 = vst.msk [vmem:[%s2114_s23 + $0x170] sm:$0xff] %vm812_vm0, %v1484_v63  ;;  %v1516_v0 = vpop.trf.xlu1 }
 0x543   : > { %1580 = vst.msk [vmem:[%s2114_s23 + $0x1f0] sm:$0xff] %vm812_vm0, %v1516_v0 }
 0x545   : > { %v1485_v1 = vpop.trf.xlu0 }
 0x546   : > { %1565 = vst.msk [vmem:[%s2114_s23 + $0x178] sm:$0xff] %vm812_vm0, %v1485_v1  ;;  %v1517_v2 = vpop.trf.xlu1 }
 0x547   : > { %1581 = vst.msk [vmem:[%s2114_s23 + $0x1f8] sm:$0xff] %vm812_vm0, %v1517_v2 }
 0x548 PF: > { %s20_s13 = sadd.s32 1, %s1829_s13  }
 0x549   : > { %p17_p4 = scmp.ge.s32.totalorder %s20_s13, 4  }
 0x54b   :  { %19 = sbr.rel (!%p17_p4) target bundleno = 1 (0x1), region = 93 }

</bundles_post_ra>
